<compile_context>
chip_gen: v5e
topology: v5e:2x2
jax: 0.10.0
libtpu: 0.0.40
codegen_flags: <defaults>
</compile_context>

<pallas_src>
import functools

import jax
import jax.numpy as jnp
from jax.experimental import pallas as pl
from jax.experimental.pallas import tpu as pltpu

SUBLANE = 8  # vreg sublane count: batch-tile rows must be a multiple of this


def _round_up(n: int, m: int) -> int:
    return ((n + m - 1) // m) * m


def posmlp_kernel(x_ref, w1_ref, b1_ref, w2_ref, b2_ref, w3_ref, b3_ref, o_ref):
    """Fused 3-layer PosMLP on one batch tile.

    Weights arrive with |W| (== 2*relu(-W) + W, the PosLinear transform) already
    applied, pre-transposed to [in_features, out_features] and cast to the MXU
    compute dtype (bf16 by default).  Biases are f32; accumulation is f32.
    """
    cdt = w1_ref.dtype
    # Cast activations to the compute dtype on the VPU (free: VPU has slack in
    # this MXU/DMA-bound kernel); avoids an extra XLA pass over x in the wrapper.
    x = x_ref[...].astype(cdt)
    # Hidden layer 1: PosLinear -> ReLU (Dropout p=0.0 is identity)
    h = jnp.dot(x, w1_ref[...], preferred_element_type=jnp.float32)
    h = jnp.maximum(h + b1_ref[...], 0.0).astype(cdt)
    # Hidden layer 2: PosLinear -> ReLU
    h = jnp.dot(h, w2_ref[...], preferred_element_type=jnp.float32)
    h = jnp.maximum(h + b2_ref[...], 0.0).astype(cdt)
    # Output layer: PosLinear only (no activation, use_bn=False)
    y = jnp.dot(h, w3_ref[...], preferred_element_type=jnp.float32)
    o_ref[...] = (y + b3_ref[...]).astype(o_ref.dtype)


def posmlp_prepare_params(w1, b1, w2, b2, w3, b3, param_dtype=jnp.bfloat16):
    """One-time parameter prep, hoisted out of the per-call forward path.

    PosLinear effective weight 2*relu(-W)+W == |W|; pre-transpose to
    [in_features, out_features] (natural MXU (K, N) operand) and cast to the
    compute dtype (bf16 default: MXU-native on v5e/v6e/v7x and half the weight
    DMA bytes).  Biases are kept in f32 and added to the f32 accumulator.
    """
    prep_w = lambda w: jnp.abs(w).T.astype(param_dtype)
    prep_b = lambda b: b.reshape(1, -1).astype(jnp.float32)
    return (prep_w(w1), prep_b(b1), prep_w(w2), prep_b(b2), prep_w(w3), prep_b(b3))


@functools.partial(jax.jit, static_argnames=("tile_m",))
def posmlp_apply(x, params, *, tile_m: int = 1024):
    w1_t, b1_r, w2_t, b2_r, w3_t, b3_r = params
    B, in_dim = x.shape
    h1 = w1_t.shape[1]
    h2 = w2_t.shape[1]
    out_dim = w3_t.shape[1]

    # Batch tile: as big as allowed (per-grid-step overhead ~0.35us), rounded up
    # to a multiple of 8 sublanes, and capped at ceil(B/2) so grid_m >= 2
    # whenever the batch allows it (lets v7x shard the 'parallel' axis over both
    # TensorCores; on v5e/v6e the extra step costs ~nothing).
    tm = max(SUBLANE, min(_round_up(tile_m, SUBLANE),
                          _round_up(pl.cdiv(B, 2), SUBLANE)))
    grid_m = pl.cdiv(B, tm)
    b_pad = grid_m * tm

    # Row-only padding (deterministic tile contents); NO lane/column padding:
    # feature dims keep their true widths -- a block dim equal to the full array
    # extent is exempt from the (8,128) divisibility rule, and rows stay
    # contiguous so the DMA is dense.
    x_p = jnp.pad(x, ((0, b_pad - B), (0, 0))) if b_pad != B else x

    # Accurate cost estimate from the true (unpadded) shapes and dtypes.
    flops = 2 * B * (in_dim * h1 + h1 * h2 + h2 * out_dim)
    bytes_accessed = (
        B * in_dim * x.dtype.itemsize
        + B * out_dim * 4
        + w1_t.size * w1_t.dtype.itemsize
        + w2_t.size * w2_t.dtype.itemsize
        + w3_t.size * w3_t.dtype.itemsize
        + (h1 + h2 + out_dim) * 4
    )

    out_padded = pl.pallas_call(
        posmlp_kernel,
        out_shape=jax.ShapeDtypeStruct((b_pad, out_dim), jnp.float32),
        grid_spec=pltpu.PrefetchScalarGridSpec(
            num_scalar_prefetch=0,
            grid=(grid_m,),
            in_specs=[
                pl.BlockSpec((tm, in_dim), lambda i: (i, 0)),   # x: tiled over batch
                pl.BlockSpec((in_dim, h1), lambda i: (0, 0)),   # weights/biases at true
                pl.BlockSpec((1, h1), lambda i: (0, 0)),        # shapes, constant index ->
                pl.BlockSpec((h1, h2), lambda i: (0, 0)),       # VMEM-resident across
                pl.BlockSpec((1, h2), lambda i: (0, 0)),        # grid steps
                pl.BlockSpec((h2, out_dim), lambda i: (0, 0)),
                pl.BlockSpec((1, out_dim), lambda i: (0, 0)),
            ],
            out_specs=pl.BlockSpec((tm, out_dim), lambda i: (i, 0)),
        ),
        compiler_params=pltpu.CompilerParams(
            dimension_semantics=("parallel",),   # batch axis: megacore-shardable on v7x
        ),
        cost_estimate=pl.CostEstimate(
            flops=flops, transcendentals=0, bytes_accessed=bytes_accessed
        ),
    )(x_p, w1_t, b1_r, w2_t, b2_r, w3_t, b3_r)

    return out_padded[:B] if b_pad != B else out_padded


def posmlp_forward(x, w1, b1, w2, b2, w3, b3, *, param_dtype=jnp.bfloat16,
                   tile_m: int = 1024):
    """Convenience one-shot wrapper (prep + apply). Prefer preparing params once."""
    params = posmlp_prepare_params(w1, b1, w2, b2, w3, b3, param_dtype)
    return posmlp_apply(x, params, tile_m=tile_m)


def posmlp_reference(x, w1, b1, w2, b2, w3, b3):
    """Pure-JAX reference mirroring the PyTorch module exactly."""
    def pos_linear(x, w, b):
        w_pos = 2.0 * jnp.maximum(-w, 0.0) + w
        return x @ w_pos.T + b
    h = jnp.maximum(pos_linear(x, w1, b1), 0.0)
    h = jnp.maximum(pos_linear(h, w2, b2), 0.0)
    return pos_linear(h, w3, b3)


if __name__ == "__main__":
    # Shapes consistent with the module: input_dim=16, dnn_units=[32, 32], output_dim=8.
    B, input_dim, h1, h2, output_dim = 8, 16, 32, 32, 8

    key = jax.random.PRNGKey(0)
    kx, k1, k2, k3, kb1, kb2, kb3 = jax.random.split(key, 7)

    x = jax.random.normal(kx, (B, input_dim), dtype=jnp.float32)
    # Deterministic synthetic parameters (PyTorch nn.Linear layout: [out, in]).
    w1 = 0.5 * jax.random.normal(k1, (h1, input_dim), dtype=jnp.float32)
    b1 = 0.1 * jax.random.normal(kb1, (h1,), dtype=jnp.float32)
    w2 = 0.5 * jax.random.normal(k2, (h2, h1), dtype=jnp.float32)
    b2 = 0.1 * jax.random.normal(kb2, (h2,), dtype=jnp.float32)
    w3 = 0.5 * jax.random.normal(k3, (output_dim, h2), dtype=jnp.float32)
    b3 = 0.1 * jax.random.normal(kb3, (output_dim,), dtype=jnp.float32)

    ref = posmlp_reference(x, w1, b1, w2, b2, w3, b3)

    # 1) f32 parameter path: kernel structure must match the reference exactly.
    params_f32 = posmlp_prepare_params(w1, b1, w2, b2, w3, b3, param_dtype=jnp.float32)
    out_f32 = jax.block_until_ready(posmlp_apply(x, params_f32))
    assert out_f32.shape == (B, output_dim)
    assert jnp.allclose(out_f32, ref, atol=1e-5, rtol=1e-5), "mismatch vs. reference (f32)"

    # 2) Default bf16 path (MXU-native), larger non-tile-aligned batch to
    #    exercise the 2-step grid, row padding and the final row slice.
    B2 = 300
    x2 = jax.random.normal(jax.random.PRNGKey(1), (B2, input_dim), dtype=jnp.float32)
    params_bf16 = posmlp_prepare_params(w1, b1, w2, b2, w3, b3)   # bf16 default
    out_bf16 = jax.block_until_ready(posmlp_apply(x2, params_bf16))
    ref2 = posmlp_reference(x2, w1, b1, w2, b2, w3, b3)
    assert out_bf16.shape == (B2, output_dim)
    rel_err = jnp.max(jnp.abs(out_bf16 - ref2)) / (jnp.max(jnp.abs(ref2)) + 1e-6)
    assert rel_err < 3e-2, f"bf16 relative error too large: {rel_err}"

    print("KERNEL_OK")
</pallas_src>

<mosaic_0001>
module attributes {stable_mosaic.version = 11 : i64} {
  func.func @posmlp_kernel(%arg0: i32, %arg1: memref<8x16xf32, #tpu.memory_space<vmem>>, %arg2: memref<16x32xf32, #tpu.memory_space<vmem>>, %arg3: memref<1x32xf32, #tpu.memory_space<vmem>>, %arg4: memref<32x32xf32, #tpu.memory_space<vmem>>, %arg5: memref<1x32xf32, #tpu.memory_space<vmem>>, %arg6: memref<32x8xf32, #tpu.memory_space<vmem>>, %arg7: memref<1x8xf32, #tpu.memory_space<vmem>>, %arg8: memref<8x8xf32, #tpu.memory_space<vmem>>) attributes {dimension_semantics = [#tpu.dimension_semantics<parallel>], iteration_bounds = array<i64: 1>, scalar_prefetch = 0 : i64, scratch_operands = 0 : i64, tpu.core_type = #tpu.core_type<tc>, window_params = [{transform_indices = @transform_0, window_bounds = array<i64: 8, 16>}, {pipeline_mode = #tpu.pipeline_mode<synchronous>, transform_indices = @transform_1, window_bounds = array<i64: 16, 32>}, {pipeline_mode = #tpu.pipeline_mode<synchronous>, transform_indices = @transform_2, window_bounds = array<i64: 1, 32>}, {pipeline_mode = #tpu.pipeline_mode<synchronous>, transform_indices = @transform_3, window_bounds = array<i64: 32, 32>}, {pipeline_mode = #tpu.pipeline_mode<synchronous>, transform_indices = @transform_4, window_bounds = array<i64: 1, 32>}, {pipeline_mode = #tpu.pipeline_mode<synchronous>, transform_indices = @transform_5, window_bounds = array<i64: 32, 8>}, {pipeline_mode = #tpu.pipeline_mode<synchronous>, transform_indices = @transform_6, window_bounds = array<i64: 1, 8>}, {transform_indices = @transform_7, window_bounds = array<i64: 8, 8>}]} {
    %c0 = arith.constant 0 : index
    %c0_0 = arith.constant 0 : index
    %0 = vector.load %arg1[%c0, %c0_0] : memref<8x16xf32, #tpu.memory_space<vmem>>, vector<8x16xf32>
    %c0_1 = arith.constant 0 : index
    %c0_2 = arith.constant 0 : index
    %1 = vector.load %arg2[%c0_1, %c0_2] : memref<16x32xf32, #tpu.memory_space<vmem>>, vector<16x32xf32>
    %cst = arith.constant dense<0.000000e+00> : vector<8x32xf32>
    %2 = tpu.matmul %0, %1, %cst {dimension_numbers = #tpu.dot_dimension_numbers<[1], [0], [0], [1], [0, 0, 1, 1], [], []>} : vector<8x16xf32>, vector<16x32xf32>, vector<8x32xf32> -> vector<8x32xf32>
    %c0_3 = arith.constant 0 : index
    %c0_4 = arith.constant 0 : index
    %3 = vector.load %arg3[%c0_3, %c0_4] : memref<1x32xf32, #tpu.memory_space<vmem>>, vector<1x32xf32>
    %4 = vector.broadcast %3 : vector<1x32xf32> to vector<8x32xf32>
    %5 = arith.addf %2, %4 : vector<8x32xf32>
    %cst_5 = arith.constant 0.000000e+00 : f32
    %6 = vector.broadcast %cst_5 : f32 to vector<8x32xf32>
    %7 = arith.maximumf %5, %6 : vector<8x32xf32>
    %c0_6 = arith.constant 0 : index
    %c0_7 = arith.constant 0 : index
    %8 = vector.load %arg4[%c0_6, %c0_7] : memref<32x32xf32, #tpu.memory_space<vmem>>, vector<32x32xf32>
    %cst_8 = arith.constant dense<0.000000e+00> : vector<8x32xf32>
    %9 = tpu.matmul %7, %8, %cst_8 {dimension_numbers = #tpu.dot_dimension_numbers<[1], [0], [0], [1], [0, 0, 1, 1], [], []>} : vector<8x32xf32>, vector<32x32xf32>, vector<8x32xf32> -> vector<8x32xf32>
    %c0_9 = arith.constant 0 : index
    %c0_10 = arith.constant 0 : index
    %10 = vector.load %arg5[%c0_9, %c0_10] : memref<1x32xf32, #tpu.memory_space<vmem>>, vector<1x32xf32>
    %11 = vector.broadcast %10 : vector<1x32xf32> to vector<8x32xf32>
    %12 = arith.addf %9, %11 : vector<8x32xf32>
    %cst_11 = arith.constant 0.000000e+00 : f32
    %13 = vector.broadcast %cst_11 : f32 to vector<8x32xf32>
    %14 = arith.maximumf %12, %13 : vector<8x32xf32>
    %c0_12 = arith.constant 0 : index
    %c0_13 = arith.constant 0 : index
    %15 = vector.load %arg6[%c0_12, %c0_13] : memref<32x8xf32, #tpu.memory_space<vmem>>, vector<32x8xf32>
    %cst_14 = arith.constant dense<0.000000e+00> : vector<8x8xf32>
    %16 = tpu.matmul %14, %15, %cst_14 {dimension_numbers = #tpu.dot_dimension_numbers<[1], [0], [0], [1], [0, 0, 1, 1], [], []>} : vector<8x32xf32>, vector<32x8xf32>, vector<8x8xf32> -> vector<8x8xf32>
    %c0_15 = arith.constant 0 : index
    %c0_16 = arith.constant 0 : index
    %17 = vector.load %arg7[%c0_15, %c0_16] : memref<1x8xf32, #tpu.memory_space<vmem>>, vector<1x8xf32>
    %18 = vector.broadcast %17 : vector<1x8xf32> to vector<8x8xf32>
    %19 = arith.addf %16, %18 : vector<8x8xf32>
    %c0_17 = arith.constant 0 : index
    %c0_18 = arith.constant 0 : index
    %20 = vector.load %arg8[%c0_17, %c0_18] : memref<8x8xf32, #tpu.memory_space<vmem>>, vector<8x8xf32>
    tpu.vector_store %arg8[%c0_17, %c0_18], %19 {strides = array<i32>} : memref<8x8xf32, #tpu.memory_space<vmem>>, vector<8x8xf32>,
    return
  }
  func.func @transform_0(%arg0: i32) -> (i32, i32) {
    %c0_i32 = arith.constant 0 : i32
    %c0_i32_0 = arith.constant 0 : i32
    return %arg0, %c0_i32 : i32, i32
  }
  func.func @transform_1(%arg0: i32) -> (i32, i32) {
    %c0_i32 = arith.constant 0 : i32
    %c0_i32_0 = arith.constant 0 : i32
    %c0_i32_1 = arith.constant 0 : i32
    return %c0_i32, %c0_i32_0 : i32, i32
  }
  func.func @transform_2(%arg0: i32) -> (i32, i32) {
    %c0_i32 = arith.constant 0 : i32
    %c0_i32_0 = arith.constant 0 : i32
    %c0_i32_1 = arith.constant 0 : i32
    return %c0_i32, %c0_i32_0 : i32, i32
  }
  func.func @transform_3(%arg0: i32) -> (i32, i32) {
    %c0_i32 = arith.constant 0 : i32
    %c0_i32_0 = arith.constant 0 : i32
    %c0_i32_1 = arith.constant 0 : i32
    return %c0_i32, %c0_i32_0 : i32, i32
  }
  func.func @transform_4(%arg0: i32) -> (i32, i32) {
    %c0_i32 = arith.constant 0 : i32
    %c0_i32_0 = arith.constant 0 : i32
    %c0_i32_1 = arith.constant 0 : i32
    return %c0_i32, %c0_i32_0 : i32, i32
  }
  func.func @transform_5(%arg0: i32) -> (i32, i32) {
    %c0_i32 = arith.constant 0 : i32
    %c0_i32_0 = arith.constant 0 : i32
    %c0_i32_1 = arith.constant 0 : i32
    return %c0_i32, %c0_i32_0 : i32, i32
  }
  func.func @transform_6(%arg0: i32) -> (i32, i32) {
    %c0_i32 = arith.constant 0 : i32
    %c0_i32_0 = arith.constant 0 : i32
    %c0_i32_1 = arith.constant 0 : i32
    return %c0_i32, %c0_i32_0 : i32, i32
  }
  func.func @transform_7(%arg0: i32) -> (i32, i32) {
    %c0_i32 = arith.constant 0 : i32
    %c0_i32_0 = arith.constant 0 : i32
    return %arg0, %c0_i32 : i32, i32
  }
}

</mosaic_0001>

<bundles_post_ra>
// kernel: posmlp_apply.1
= control target key start
LH: loop header
LB: loop body
LE: loop exit
PB: predicated region body
PF: predicated region fallthrough
CT: control target
= control target key end

     0   :  { %12 = vsyncpa [#allocation3], 0  ;;  %s306_s0 = inlined_call_operand.vmem [shape: f32[8,16], index: 0, kind: input, shape index: {}]   ;;  %s307_s1 = inlined_call_operand.hbm [shape: f32[16,32], index: 1, kind: input, shape index: {}]   ;;  %s308_s2 = inlined_call_operand.vmem [shape: f32[1,32], index: 2, kind: input, shape index: {}]   ;;  %s309_s3 = inlined_call_operand.vmem [shape: f32[32,32], index: 3, kind: input, shape index: {}]   ;;  %s310_s4 = inlined_call_operand.vmem [shape: f32[1,32], index: 4, kind: input, shape index: {}]   ;;  %s311_s5 = inlined_call_operand.vmem [shape: f32[32,8], index: 5, kind: input, shape index: {}]   ;;  %s312_s6 = inlined_call_operand.vmem [shape: f32[1,8], index: 6, kind: input, shape index: {}]   ;;  %s313_s7 = inlined_call_operand.hbm [shape: f32[8,8], index: 7, kind: output, shape index: {}]  }
   0x1   :  { %13 = vsyncpa [#allocation4], 0  ;;  %s20_s26 = sshll.u32 %s307_s1, 4  ;;  %s220_s27 = smov [#allocation2]   ;;  %s21_s26 = int_to_ptr.hbm [resolvable:$true] %s20_s26 }
   0x2   :  { %s22_s28 = sshll.u32 %s220_s27, 4  ;;  %s221_s29 = smov 128   ;;  %s23_s28 = int_to_ptr.vmem [resolvable:$true] %s22_s28 }
   0x3   :  { %s222_s30 = smov 8  }
   0x4   :  { %28 = dma.hbm_to_vmem [thread:$0]  %s21_s26, 256, %s23_s28, [#allocation3], %s221_s29, %s221_s29, %s222_s30  }
   0x5   :  { %216 = dma.done.wait [#allocation3], 256  }
   0x6   :  { %217 = vsyncadd [#allocation3], 4294967040  ;;  %v45_v0 = vld [vmem:[#allocation2 + $0x8] sm:$0xff]  ;;  %v44_v1 = vld [vmem:[#allocation2] sm:$0xff]  ;;  %vm50_vm0 = vcmask 130048   ;;  %vm83_vm1 = vcmask 261120  }
   0x7   :  { %68 = vmatpush.msra.mxu0 %v45_v0  ;;  %v43_v2 = vld [vmem:[%s306_s0] sm:$0xff]  ;;  %v78_v3 = vld [vmem:[%s309_s3 + $0x18] sm:$0xff]  ;;  %v77_v4 = vld [vmem:[%s309_s3 + $0x10] sm:$0xff]  ;;  %s223_s28 = smov [#allocation5]   ;;  %s148_s9 = sshll.u32 %s313_s7, 4  ;;  %vm139_vm2 = vcmask 64512   ;;  %s149_s9 = int_to_ptr.hbm [resolvable:$true] %s148_s9 }
   0x8   :  { %99 = vmatpush.msra.mxu1 %v78_v3  ;;  %v76_v5 = vld [vmem:[%s309_s3 + $0x8] sm:$0xff]  ;;  %v75_v6 = vld [vmem:[%s309_s3] sm:$0xff]  ;;  %v111_v7 = vld [vmem:[%s311_s5 + $0x18] sm:$0xff]  ;;  %s146_s29 = sshll.u32 %s223_s28, 4  ;;  %s147_s29 = int_to_ptr.vmem [resolvable:$true] %s146_s29 }
   0x9   :  { %69 = vmatpush.msra.mxu0 %v44_v1  ;;  %131 = vmatpush.msra.mxu2 %v111_v7  ;;  %v165_v8 = vld [vmem:[%s308_s2] ss:$0 sm:$0xff]  ;;  %v110_v12 = vld [vmem:[%s311_s5 + $0x10] sm:$0xff]  ;;  %v109_v13 = vld [vmem:[%s311_s5 + $0x8] sm:$0xff] }
   0xa   :  { %158 = vmatmul.msk.f32.vlgmr.msra.gmra.mxu0 %vm50_vm0, %v43_v2  ;;  %100 = vmatpush.msra.mxu1 %v77_v4  ;;  %v108_v14 = vld [vmem:[%s311_s5] sm:$0xff] }
   0xb   :  { %132 = vmatpush.msra.mxu2 %v110_v12  ;;  %v166_v15 = vld [vmem:[%s310_s4] ss:$0 sm:$0xff] }
   0xc   :  { %101 = vmatpush.msra.mxu1 %v76_v5  ;;  %v167_v19 = vld [vmem:[%s312_s6] ss:$0 sm:$0xff] }
   0xd   :  { %133 = vmatpush.msra.mxu2 %v109_v13 }
   0xe   :  { %102 = vmatpush.msra.mxu1 %v75_v6 }
   0xf   :  { %134 = vmatpush.msra.mxu2 %v108_v14 }
  0x87   :  { %v71_v9 = vpop.f32.mrf.mxu0 }
  0x88   :  { %v72_v10 = vadd.f32 %v165_v8, %v71_v9 }
  0x8a   :  { %v74_v11 = vmax.f32 %v72_v10, 0.0 }
  0x8c   :  { %159 = vmatmul.msk.f32.vlgmr.msra.gmra.mxu1 %vm83_vm1, %v74_v11 }
 0x109   :  { %v104_v16 = vpop.f32.mrf.mxu1 }
 0x10a   :  { %v105_v17 = vadd.f32 %v166_v15, %v104_v16 }
 0x10c   :  { %v107_v18 = vmax.f32 %v105_v17, 0.0 }
 0x10e   :  { %160 = vmatmul.msk.f32.vlgmr.msra.gmra.mxu2 %vm83_vm1, %v107_v18 }
 0x191   :  { %v136_v20 = vpop.f32.mrf.mxu2 }
 0x192   :  { %v137_v21 = vadd.f32 %v167_v19, %v136_v20 }
 0x194   :  { %140 = vst.msk [vmem:[#allocation5] sm:$0xff] %vm139_vm2, %v137_v21 }
 0x195   :  { %151 = dma.vmem_to_hbm [thread:$0]  %s147_s29, 128, %s149_s9, [#allocation4]  }
 0x196   :  { %218 = dma.done.wait [#allocation4], 128  }
 0x197   :  { %219 = vsyncadd [#allocation4], 4294967168 }
 0x198   :  { %156 = vsyncpa [#allocation3], 1 }
 0x199   :  { %157 = vsyncpa [#allocation4], 1 }

</bundles_post_ra>
